<compile_context>
chip_gen: v5e
topology: v5e:2x2
jax: 0.10.0
libtpu: 0.0.40
codegen_flags: <defaults>
</compile_context>

<pallas_src>
import math
from functools import partial

import jax
import jax.numpy as jnp
from jax import lax
from jax.experimental import pallas as pl
from jax.experimental.pallas import tpu as pltpu


# ----------------------------- in-kernel helpers -----------------------------

def _rmsnorm(x, scale, eps=1e-8):
    # PyTorch ref: norm = x.norm(dim=-1, keepdim=True) / sqrt(D); out = scale * x / (norm + eps)
    d = x.shape[-1]
    norm = jnp.sqrt(jnp.sum(x * x, axis=-1, keepdims=True)) * (1.0 / math.sqrt(d))
    inv = pl.reciprocal(norm + eps, approx=False)      # (rows,1) reciprocal, not a (rows,D) divide
    return scale * x * inv


def _gelu_exact(x):
    # nn.GELU() default = exact erf-based GELU (kept exact to preserve semantics)
    # TODO(synk): tanh-approximate GELU would be cheaper on v5e but changes numerics.
    return 0.5 * x * (1.0 + lax.erf(x / math.sqrt(2.0)))


# --------------------------------- kernel ------------------------------------

def transformer_encoder_kernel(num_heads, seq_len, ff_chunk,
                               x_ref,
                               wqkv_ref, bqkv_ref, wo_ref, bo_ref, s1_ref,
                               w1_ref, b1_ref, w2_ref, b2_ref, s2_ref,
                               o_ref,
                               x_sc, cat_sc):
    rows, D = x_ref.shape                  # rows = batch_block * seq_len (lane-dense)
    H = num_heads
    S = seq_len
    Bt = rows // S
    hd = D // H
    hidden = w1_ref.shape[1]

    l = pl.program_id(1)
    n_layers = pl.num_programs(1)

    # Residual stream lives in VMEM scratch across the layer grid axis.
    @pl.when(l == 0)
    def _():
        x_sc[...] = x_ref[...].astype(jnp.float32)

    x = x_sc[...]                          # (rows, D) f32
    xb = x.astype(jnp.bfloat16)

    # --- fused QKV projection: ONE wide MXU dot (N = 3D), f32 accumulation ---
    qkv = jnp.dot(xb, wqkv_ref[...],
                  preferred_element_type=jnp.float32) + bqkv_ref[...]   # (rows, 3D)

    def head_split(base):
        # Lane range [base, base+D) of qkv -> batched-head layout (H*Bt, S, hd).
        # (stack stays f32; the (H,rows,hd)->(H*Bt,S,hd) reshape is a layout-preserving
        #  major-dim regroup since S % 8 == 0.)
        return jnp.stack(
            [qkv[:, base + h * hd: base + (h + 1) * hd] for h in range(H)], axis=0
        ).reshape(H * Bt, S, hd)

    qh = head_split(0).astype(jnp.bfloat16)
    kh = head_split(D).astype(jnp.bfloat16)
    vh = head_split(2 * D).astype(jnp.bfloat16)

    # Scores / softmax / AV: single batched rank-3 contractions over the fused
    # (head*batch) leading axis.  1/sqrt(hd) already folded into the Q weights.
    s = jnp.einsum('nqe,nke->nqk', qh, kh,
                   preferred_element_type=jnp.float32)          # (H*Bt, S, S)
    m = jnp.max(s, axis=-1, keepdims=True)
    p = jnp.exp(s - m)
    p = p * pl.reciprocal(jnp.sum(p, axis=-1, keepdims=True), approx=True)
    o = jnp.einsum('nqk,nke->nqe', p.astype(jnp.bfloat16), vh,
                   preferred_element_type=jnp.float32)          # (H*Bt, S, hd)
    o = o.reshape(H, rows, hd)

    # --- re-pack heads lane-dense (masked lane-slice stores into VMEM scratch),
    #     then ONE K=D output-projection dot (full MXU depth, no per-head adds) ---
    for h in range(H):
        cat_sc[:, h * hd:(h + 1) * hd] = o[h]
    attn = jnp.dot(cat_sc[...].astype(jnp.bfloat16), wo_ref[...],
                   preferred_element_type=jnp.float32) + bo_ref[...]

    # --- residual + RMSNorm1 (f32 element-wise) ---
    x1 = _rmsnorm(x + attn, s1_ref[...])

    # --- feed-forward: Linear(D,4D) -> GELU -> Linear(4D,D), chunked over hidden ---
    x1b = x1.astype(jnp.bfloat16)
    ff = None
    for c0 in range(0, hidden, ff_chunk):
        c1 = min(hidden, c0 + ff_chunk)
        hblk = jnp.dot(x1b, w1_ref[:, c0:c1],
                       preferred_element_type=jnp.float32) + b1_ref[:, c0:c1]
        hblk = _gelu_exact(hblk)
        part = jnp.dot(hblk.astype(jnp.bfloat16), w2_ref[c0:c1, :],
                       preferred_element_type=jnp.float32)
        ff = part if ff is None else ff + part      # first chunk initializes (no zeros tile)
    ff = ff + b2_ref[...]

    # --- residual + RMSNorm2; carry residual, write output only on the last layer ---
    x_new = _rmsnorm(x1 + ff, s2_ref[...])
    x_sc[...] = x_new

    @pl.when(l == n_layers - 1)
    def _():
        o_ref[...] = x_new.astype(o_ref.dtype)


# ------------------------------- host wrapper ---------------------------------

_PARAM_ORDER = ('wqkv', 'bqkv', 'wo', 'bo', 's1', 'w1', 'b1', 'w2', 'b2', 's2')


def _prepare_params(layer_params, num_heads):
    """Stack layers, fuse Q/K/V weights, fold 1/sqrt(hd), cast MXU weights to bf16."""
    D = layer_params[0]['wq'].shape[0]
    hd = D // num_heads
    q_scale = 1.0 / math.sqrt(hd)
    mm = jnp.bfloat16    # MXU input dtype (f32 accumulation in-kernel)

    def stack(name):
        return jnp.stack([p[name] for p in layer_params], axis=0)

    wqkv = jnp.concatenate([stack('wq') * q_scale, stack('wk'), stack('wv')], axis=-1)  # (L,D,3D)
    bqkv = jnp.concatenate([stack('bq') * q_scale, stack('bk'), stack('bv')], axis=-1)  # (L,1,3D)

    return {
        'wqkv': wqkv.astype(mm),
        'bqkv': bqkv,
        'wo': stack('wo').astype(mm),    # (L, D, D)
        'bo': stack('bo'),               # (L, 1, D)
        's1': stack('s1'),
        'w1': stack('w1').astype(mm),    # (L, D, 4D)
        'b1': stack('b1'),
        'w2': stack('w2').astype(mm),    # (L, 4D, D)
        'b2': stack('b2'),
        's2': stack('s2'),
    }


def _vmem_budget():
    """Generation-aware (vmem_limit_bytes, ff_chunk_cap)."""
    try:
        cap = int(pltpu.get_tpu_info().vmem_capacity_bytes)
    except Exception:
        cap = 64 * 1024 * 1024               # conservative fallback (v7x per-core)
    if cap >= 96 * 1024 * 1024:              # v5e / v6e: 128 MiB physical
        return 100 * 1024 * 1024, 1024
    return 48 * 1024 * 1024, 512             # v7x: 64 MiB physical, keep headroom


def transformer_encoder(x, layer_params, num_heads, batch_block=None):
    B, S, D = x.shape
    L = len(layer_params)
    assert D % num_heads == 0
    # S must be a multiple of the f32 sublane tile so the in-kernel head-batching
    # reshape is layout preserving (bf16 cast happens AFTER the reshape on purpose).
    assert S % 8 == 0, "sequence length must be a multiple of 8"

    # Default: >=2 grid steps along the batch axis (megacore sharding / pipelining).
    if batch_block is None:
        bb = B // 2 if (B >= 2 and B % 2 == 0) else (1 if B >= 2 else B)
    else:
        bb = batch_block
    assert B % bb == 0

    packed = _prepare_params(layer_params, num_heads)
    weights = [packed[name] for name in _PARAM_ORDER]

    vmem_limit, ff_chunk_cap = _vmem_budget()
    hidden = packed['w1'].shape[-1]
    ff_chunk = min(hidden, ff_chunk_cap)

    # Lane-dense token-major layout; reshapes done host-side (free in XLA).
    x2d = x.reshape(B * S, D)
    rows = bb * S

    # Activations: indexed by the batch-block axis only (re-used across the layer axis).
    in_specs = [pl.BlockSpec((rows, D), lambda i, l: (i, 0))]
    # Weights: streamed per layer (leading layer dim squeezed out of the kernel view).
    for w in weights:
        nrest = w.ndim - 1
        in_specs.append(
            pl.BlockSpec((None,) + w.shape[1:],
                         lambda i, l, _n=nrest: (l,) + (0,) * _n))

    out2d = pl.pallas_call(
        partial(transformer_encoder_kernel, num_heads, S, ff_chunk),
        out_shape=jax.ShapeDtypeStruct((B * S, D), x.dtype),
        grid=(B // bb, L),
        in_specs=in_specs,
        out_specs=pl.BlockSpec((rows, D), lambda i, l: (i, 0)),
        scratch_shapes=[
            pltpu.VMEM((rows, D), jnp.float32),   # residual stream carried across layers
            pltpu.VMEM((rows, D), jnp.float32),   # lane-dense head re-pack buffer
        ],
        compiler_params=pltpu.CompilerParams(
            dimension_semantics=("parallel", "arbitrary"),
            vmem_limit_bytes=vmem_limit,
        ),
    )(x2d, *weights)
    return out2d.reshape(B, S, D)


# --------------------------- deterministic params ------------------------------

def init_layer_params(key, dim):
    ks = jax.random.split(key, 8)
    hidden = 4 * dim
    std = 0.05
    return {
        # attention in/out projections (already transposed for x @ W form)
        'wq': std * jax.random.normal(ks[0], (dim, dim), jnp.float32),
        'wk': std * jax.random.normal(ks[1], (dim, dim), jnp.float32),
        'wv': std * jax.random.normal(ks[2], (dim, dim), jnp.float32),
        'bq': jnp.zeros((1, dim), jnp.float32),
        'bk': jnp.zeros((1, dim), jnp.float32),
        'bv': jnp.zeros((1, dim), jnp.float32),
        'wo': std * jax.random.normal(ks[3], (dim, dim), jnp.float32),
        'bo': std * jax.random.normal(ks[4], (1, dim), jnp.float32),
        # RMSNorm scales (PyTorch init: ones)
        's1': jnp.ones((1, dim), jnp.float32),
        's2': jnp.ones((1, dim), jnp.float32),
        # feed-forward
        'w1': std * jax.random.normal(ks[5], (dim, hidden), jnp.float32),
        'b1': std * jax.random.normal(ks[6], (1, hidden), jnp.float32),
        'w2': std * jax.random.normal(ks[7], (hidden, dim), jnp.float32),
        'b2': jnp.zeros((1, dim), jnp.float32),
    }


# ------------------------------ pure-JAX reference -----------------------------

def _ref_rmsnorm(x, scale, eps=1e-8):
    norm = jnp.linalg.norm(x, axis=-1, keepdims=True) * (1.0 / math.sqrt(x.shape[-1]))
    return scale * x / (norm + eps)


def _ref_block(x, p, num_heads):
    B, S, D = x.shape
    hd = D // num_heads
    q = x @ p['wq'] + p['bq']
    k = x @ p['wk'] + p['bk']
    v = x @ p['wv'] + p['bv']
    q = q.reshape(B, S, num_heads, hd).transpose(0, 2, 1, 3)
    k = k.reshape(B, S, num_heads, hd).transpose(0, 2, 1, 3)
    v = v.reshape(B, S, num_heads, hd).transpose(0, 2, 1, 3)
    s = jnp.einsum('bhqd,bhkd->bhqk', q, k) / math.sqrt(hd)
    a = jax.nn.softmax(s, axis=-1)
    o = jnp.einsum('bhqk,bhkd->bhqd', a, v).transpose(0, 2, 1, 3).reshape(B, S, D)
    o = o @ p['wo'] + p['bo']
    x1 = _ref_rmsnorm(x + o, p['s1'])
    h = jax.nn.gelu(x1 @ p['w1'] + p['b1'], approximate=False)
    ff = h @ p['w2'] + p['b2']
    return _ref_rmsnorm(x1 + ff, p['s2'])


# ------------------------------------ main -------------------------------------

if __name__ == "__main__":
    B, S, D, H, L = 2, 8, 32, 4, 2

    key = jax.random.PRNGKey(0)
    kx, *klayers = jax.random.split(key, 1 + L)
    x = jax.random.normal(kx, (B, S, D), jnp.float32)
    layer_params = [init_layer_params(k, D) for k in klayers]

    out = transformer_encoder(x, layer_params, H)
    out = jax.block_until_ready(out)

    ref = x
    for p in layer_params:
        ref = _ref_block(ref, p, H)

    assert out.shape == (B, S, D)
    # bf16 MXU inputs + approximate softmax reciprocal vs a pure-f32 reference:
    # tolerance loosened accordingly (expected max error ~1e-2).
    assert jnp.allclose(out, ref, atol=5e-2, rtol=5e-2), "mismatch vs JAX reference"
    print("KERNEL_OK")
</pallas_src>

<mosaic_0001>
module attributes {stable_mosaic.version = 11 : i64} {
  func.func @transformer_encoder_kernel(%arg0: i32, %arg1: i32, %arg2: memref<8x32xf32, #tpu.memory_space<vmem>>, %arg3: memref<1x32x96xbf16, #tpu.memory_space<vmem>>, %arg4: memref<1x1x96xf32, #tpu.memory_space<vmem>>, %arg5: memref<1x32x32xbf16, #tpu.memory_space<vmem>>, %arg6: memref<1x1x32xf32, #tpu.memory_space<vmem>>, %arg7: memref<1x1x32xf32, #tpu.memory_space<vmem>>, %arg8: memref<1x32x128xbf16, #tpu.memory_space<vmem>>, %arg9: memref<1x1x128xf32, #tpu.memory_space<vmem>>, %arg10: memref<1x128x32xbf16, #tpu.memory_space<vmem>>, %arg11: memref<1x1x32xf32, #tpu.memory_space<vmem>>, %arg12: memref<1x1x32xf32, #tpu.memory_space<vmem>>, %arg13: memref<8x32xf32, #tpu.memory_space<vmem>>, %arg14: memref<8x32xf32, #tpu.memory_space<vmem>>, %arg15: memref<8x32xf32, #tpu.memory_space<vmem>>) attributes {dimension_semantics = [#tpu.dimension_semantics<parallel>, #tpu.dimension_semantics<arbitrary>], iteration_bounds = array<i64: 2, 2>, scalar_prefetch = 0 : i64, scratch_operands = 2 : i64, tpu.core_type = #tpu.core_type<tc>, window_params = [{transform_indices = @transform_0, window_bounds = array<i64: 8, 32>}, {transform_indices = @transform_1, window_bounds = array<i64: 1, 32, 96>}, {transform_indices = @transform_2, window_bounds = array<i64: 1, 1, 96>}, {transform_indices = @transform_3, window_bounds = array<i64: 1, 32, 32>}, {transform_indices = @transform_4, window_bounds = array<i64: 1, 1, 32>}, {transform_indices = @transform_5, window_bounds = array<i64: 1, 1, 32>}, {transform_indices = @transform_6, window_bounds = array<i64: 1, 32, 128>}, {transform_indices = @transform_7, window_bounds = array<i64: 1, 1, 128>}, {transform_indices = @transform_8, window_bounds = array<i64: 1, 128, 32>}, {transform_indices = @transform_9, window_bounds = array<i64: 1, 1, 32>}, {transform_indices = @transform_10, window_bounds = array<i64: 1, 1, 32>}, {transform_indices = @transform_11, window_bounds = array<i64: 8, 32>}]} {
    %c0_i32 = arith.constant 0 : i32
    %0 = arith.cmpi eq, %arg1, %c0_i32 : i32
    %1 = arith.extui %0 : i1 to i32
    %c0_i32_0 = arith.constant 0 : i32
    %2 = arith.cmpi ne, %1, %c0_i32_0 : i32
    scf.if %2 {
      %c0_58 = arith.constant 0 : index
      %c0_59 = arith.constant 0 : index
      %136 = vector.load %arg2[%c0_58, %c0_59] : memref<8x32xf32, #tpu.memory_space<vmem>>, vector<8x32xf32>
      %c0_60 = arith.constant 0 : index
      %c0_61 = arith.constant 0 : index
      %137 = vector.load %arg14[%c0_60, %c0_61] : memref<8x32xf32, #tpu.memory_space<vmem>>, vector<8x32xf32>
      tpu.vector_store %arg14[%c0_60, %c0_61], %136 {strides = array<i32>} : memref<8x32xf32, #tpu.memory_space<vmem>>, vector<8x32xf32>,
    } else {
    }
    %c0 = arith.constant 0 : index
    %c0_1 = arith.constant 0 : index
    %3 = vector.load %arg14[%c0, %c0_1] : memref<8x32xf32, #tpu.memory_space<vmem>>, vector<8x32xf32>
    %4 = arith.truncf %3 : vector<8x32xf32> to vector<8x32xbf16>
    %c0_2 = arith.constant 0 : index
    %c0_3 = arith.constant 0 : index
    %c0_4 = arith.constant 0 : index
    %5 = vector.load %arg3[%c0_2, %c0_3, %c0_4] : memref<1x32x96xbf16, #tpu.memory_space<vmem>>, vector<1x32x96xbf16>
    %6 = vector.shape_cast %5 : vector<1x32x96xbf16> to vector<32x96xbf16>
    %cst = arith.constant dense<0.000000e+00> : vector<8x96xf32>
    %7 = tpu.matmul %4, %6, %cst {dimension_numbers = #tpu.dot_dimension_numbers<[1], [0], [0], [1], [0, 0, 1, 1], [], []>} : vector<8x32xbf16>, vector<32x96xbf16>, vector<8x96xf32> -> vector<8x96xf32>
    %c0_5 = arith.constant 0 : index
    %c0_6 = arith.constant 0 : index
    %c0_7 = arith.constant 0 : index
    %8 = vector.load %arg4[%c0_5, %c0_6, %c0_7] : memref<1x1x96xf32, #tpu.memory_space<vmem>>, vector<1x1x96xf32>
    %9 = vector.shape_cast %8 : vector<1x1x96xf32> to vector<1x96xf32>
    %10 = vector.broadcast %9 : vector<1x96xf32> to vector<8x96xf32>
    %11 = arith.addf %7, %10 : vector<8x96xf32>
    %12 = vector.extract_strided_slice %11 {offsets = [0, 0], sizes = [8, 8], strides = [1, 1]} : vector<8x96xf32> to vector<8x8xf32>
    %13 = vector.extract_strided_slice %11 {offsets = [0, 8], sizes = [8, 8], strides = [1, 1]} : vector<8x96xf32> to vector<8x8xf32>
    %14 = vector.extract_strided_slice %11 {offsets = [0, 16], sizes = [8, 8], strides = [1, 1]} : vector<8x96xf32> to vector<8x8xf32>
    %15 = vector.extract_strided_slice %11 {offsets = [0, 24], sizes = [8, 8], strides = [1, 1]} : vector<8x96xf32> to vector<8x8xf32>
    %16 = vector.shape_cast %12 : vector<8x8xf32> to vector<1x8x8xf32>
    %17 = vector.shape_cast %13 : vector<8x8xf32> to vector<1x8x8xf32>
    %18 = vector.shape_cast %14 : vector<8x8xf32> to vector<1x8x8xf32>
    %19 = vector.shape_cast %15 : vector<8x8xf32> to vector<1x8x8xf32>
    %20 = tpu.concatenate %16, %17, %18, %19 in 0 : vector<1x8x8xf32>, vector<1x8x8xf32>, vector<1x8x8xf32>, vector<1x8x8xf32> -> vector<4x8x8xf32>
    %21 = arith.truncf %20 : vector<4x8x8xf32> to vector<4x8x8xbf16>
    %22 = vector.extract_strided_slice %11 {offsets = [0, 32], sizes = [8, 8], strides = [1, 1]} : vector<8x96xf32> to vector<8x8xf32>
    %23 = vector.extract_strided_slice %11 {offsets = [0, 40], sizes = [8, 8], strides = [1, 1]} : vector<8x96xf32> to vector<8x8xf32>
    %24 = vector.extract_strided_slice %11 {offsets = [0, 48], sizes = [8, 8], strides = [1, 1]} : vector<8x96xf32> to vector<8x8xf32>
    %25 = vector.extract_strided_slice %11 {offsets = [0, 56], sizes = [8, 8], strides = [1, 1]} : vector<8x96xf32> to vector<8x8xf32>
    %26 = vector.shape_cast %22 : vector<8x8xf32> to vector<1x8x8xf32>
    %27 = vector.shape_cast %23 : vector<8x8xf32> to vector<1x8x8xf32>
    %28 = vector.shape_cast %24 : vector<8x8xf32> to vector<1x8x8xf32>
    %29 = vector.shape_cast %25 : vector<8x8xf32> to vector<1x8x8xf32>
    %30 = tpu.concatenate %26, %27, %28, %29 in 0 : vector<1x8x8xf32>, vector<1x8x8xf32>, vector<1x8x8xf32>, vector<1x8x8xf32> -> vector<4x8x8xf32>
    %31 = arith.truncf %30 : vector<4x8x8xf32> to vector<4x8x8xbf16>
    %32 = vector.extract_strided_slice %11 {offsets = [0, 64], sizes = [8, 8], strides = [1, 1]} : vector<8x96xf32> to vector<8x8xf32>
    %33 = vector.extract_strided_slice %11 {offsets = [0, 72], sizes = [8, 8], strides = [1, 1]} : vector<8x96xf32> to vector<8x8xf32>
    %34 = vector.extract_strided_slice %11 {offsets = [0, 80], sizes = [8, 8], strides = [1, 1]} : vector<8x96xf32> to vector<8x8xf32>
    %35 = vector.extract_strided_slice %11 {offsets = [0, 88], sizes = [8, 8], strides = [1, 1]} : vector<8x96xf32> to vector<8x8xf32>
    %36 = vector.shape_cast %32 : vector<8x8xf32> to vector<1x8x8xf32>
    %37 = vector.shape_cast %33 : vector<8x8xf32> to vector<1x8x8xf32>
    %38 = vector.shape_cast %34 : vector<8x8xf32> to vector<1x8x8xf32>
    %39 = vector.shape_cast %35 : vector<8x8xf32> to vector<1x8x8xf32>
    %40 = tpu.concatenate %36, %37, %38, %39 in 0 : vector<1x8x8xf32>, vector<1x8x8xf32>, vector<1x8x8xf32>, vector<1x8x8xf32> -> vector<4x8x8xf32>
    %41 = arith.truncf %40 : vector<4x8x8xf32> to vector<4x8x8xbf16>
    "tpu.trace_start"() <{level = 10 : i32, message = "nqe,nke->nqk"}> : () -> ()
    %cst_8 = arith.constant dense<0.000000e+00> : vector<4x8x8xf32>
    %42 = tpu.matmul %21, %31, %cst_8 {dimension_numbers = #tpu.dot_dimension_numbers<[2], [2], [1], [1], [0, 0, 0, 1, 1, 1], [0], [0]>} : vector<4x8x8xbf16>, vector<4x8x8xbf16>, vector<4x8x8xf32> -> vector<4x8x8xf32>
    "tpu.trace_stop"() : () -> ()
    %cst_9 = arith.constant dense<0xFF800000> : vector<4x8xf32>
    %43 = vector.multi_reduction <maximumf>, %42, %cst_9 [2] : vector<4x8x8xf32> to vector<4x8xf32>
    %44 = vector.shape_cast %43 : vector<4x8xf32> to vector<4x8x1xf32>
    %45 = vector.broadcast %44 : vector<4x8x1xf32> to vector<4x8x8xf32>
    %46 = arith.subf %42, %45 : vector<4x8x8xf32>
    %47 = math.exp %46 : vector<4x8x8xf32>
    %cst_10 = arith.constant dense<0.000000e+00> : vector<4x8xf32>
    %48 = vector.multi_reduction <add>, %47, %cst_10 [2] : vector<4x8x8xf32> to vector<4x8xf32>
    %49 = vector.shape_cast %48 : vector<4x8xf32> to vector<4x8x1xf32>
    %50 = tpu.reciprocal %49 {approx = true} : vector<4x8x1xf32> -> vector<4x8x1xf32>
    %51 = vector.broadcast %50 : vector<4x8x1xf32> to vector<4x8x8xf32>
    %52 = arith.mulf %47, %51 : vector<4x8x8xf32>
    %53 = arith.truncf %52 : vector<4x8x8xf32> to vector<4x8x8xbf16>
    "tpu.trace_start"() <{level = 10 : i32, message = "nqk,nke->nqe"}> : () -> ()
    %cst_11 = arith.constant dense<0.000000e+00> : vector<4x8x8xf32>
    %54 = tpu.matmul %53, %41, %cst_11 {dimension_numbers = #tpu.dot_dimension_numbers<[2], [1], [1], [2], [0, 0, 0, 1, 1, 2], [0], [0]>} : vector<4x8x8xbf16>, vector<4x8x8xbf16>, vector<4x8x8xf32> -> vector<4x8x8xf32>
    "tpu.trace_stop"() : () -> ()
    %55 = vector.extract_strided_slice %54 {offsets = [0, 0, 0], sizes = [1, 8, 8], strides = [1, 1, 1]} : vector<4x8x8xf32> to vector<1x8x8xf32>
    %56 = vector.shape_cast %55 : vector<1x8x8xf32> to vector<8x8xf32>
    %c0_12 = arith.constant 0 : index
    %c0_13 = arith.constant 0 : index
    %57 = vector.load %arg15[%c0_12, %c0_13] : memref<8x32xf32, #tpu.memory_space<vmem>>, vector<8x8xf32>
    tpu.vector_store %arg15[%c0_12, %c0_13], %56 {strides = array<i32>} : memref<8x32xf32, #tpu.memory_space<vmem>>, vector<8x8xf32>,
    %58 = vector.extract_strided_slice %54 {offsets = [1, 0, 0], sizes = [1, 8, 8], strides = [1, 1, 1]} : vector<4x8x8xf32> to vector<1x8x8xf32>
    %59 = vector.shape_cast %58 : vector<1x8x8xf32> to vector<8x8xf32>
    %c0_14 = arith.constant 0 : index
    %c8 = arith.constant 8 : index
    %60 = vector.load %arg15[%c0_14, %c8] : memref<8x32xf32, #tpu.memory_space<vmem>>, vector<8x8xf32>
    tpu.vector_store %arg15[%c0_14, %c8], %59 {strides = array<i32>} : memref<8x32xf32, #tpu.memory_space<vmem>>, vector<8x8xf32>,
    %61 = vector.extract_strided_slice %54 {offsets = [2, 0, 0], sizes = [1, 8, 8], strides = [1, 1, 1]} : vector<4x8x8xf32> to vector<1x8x8xf32>
    %62 = vector.shape_cast %61 : vector<1x8x8xf32> to vector<8x8xf32>
    %c0_15 = arith.constant 0 : index
    %c16 = arith.constant 16 : index
    %63 = vector.load %arg15[%c0_15, %c16] : memref<8x32xf32, #tpu.memory_space<vmem>>, vector<8x8xf32>
    tpu.vector_store %arg15[%c0_15, %c16], %62 {strides = array<i32>} : memref<8x32xf32, #tpu.memory_space<vmem>>, vector<8x8xf32>,
    %64 = vector.extract_strided_slice %54 {offsets = [3, 0, 0], sizes = [1, 8, 8], strides = [1, 1, 1]} : vector<4x8x8xf32> to vector<1x8x8xf32>
    %65 = vector.shape_cast %64 : vector<1x8x8xf32> to vector<8x8xf32>
    %c0_16 = arith.constant 0 : index
    %c24 = arith.constant 24 : index
    %66 = vector.load %arg15[%c0_16, %c24] : memref<8x32xf32, #tpu.memory_space<vmem>>, vector<8x8xf32>
    tpu.vector_store %arg15[%c0_16, %c24], %65 {strides = array<i32>} : memref<8x32xf32, #tpu.memory_space<vmem>>, vector<8x8xf32>,
    %c0_17 = arith.constant 0 : index
    %c0_18 = arith.constant 0 : index
    %67 = vector.load %arg15[%c0_17, %c0_18] : memref<8x32xf32, #tpu.memory_space<vmem>>, vector<8x32xf32>
    %68 = arith.truncf %67 : vector<8x32xf32> to vector<8x32xbf16>
    %c0_19 = arith.constant 0 : index
    %c0_20 = arith.constant 0 : index
    %c0_21 = arith.constant 0 : index
    %69 = vector.load %arg5[%c0_19, %c0_20, %c0_21] : memref<1x32x32xbf16, #tpu.memory_space<vmem>>, vector<1x32x32xbf16>
    %70 = vector.shape_cast %69 : vector<1x32x32xbf16> to vector<32x32xbf16>
    %cst_22 = arith.constant dense<0.000000e+00> : vector<8x32xf32>
    %71 = tpu.matmul %68, %70, %cst_22 {dimension_numbers = #tpu.dot_dimension_numbers<[1], [0], [0], [1], [0, 0, 1, 1], [], []>} : vector<8x32xbf16>, vector<32x32xbf16>, vector<8x32xf32> -> vector<8x32xf32>
    %c0_23 = arith.constant 0 : index
    %c0_24 = arith.constant 0 : index
    %c0_25 = arith.constant 0 : index
    %72 = vector.load %arg6[%c0_23, %c0_24, %c0_25] : memref<1x1x32xf32, #tpu.memory_space<vmem>>, vector<1x1x32xf32>
    %73 = vector.shape_cast %72 : vector<1x1x32xf32> to vector<1x32xf32>
    %74 = vector.broadcast %73 : vector<1x32xf32> to vector<8x32xf32>
    %75 = arith.addf %71, %74 : vector<8x32xf32>
    %76 = arith.addf %3, %75 : vector<8x32xf32>
    %c0_26 = arith.constant 0 : index
    %c0_27 = arith.constant 0 : index
    %c0_28 = arith.constant 0 : index
    %77 = vector.load %arg7[%c0_26, %c0_27, %c0_28] : memref<1x1x32xf32, #tpu.memory_space<vmem>>, vector<1x1x32xf32>
    %78 = vector.shape_cast %77 : vector<1x1x32xf32> to vector<1x32xf32>
    %79 = arith.mulf %76, %76 : vector<8x32xf32>
    %cst_29 = arith.constant dense<0.000000e+00> : vector<8xf32>
    %80 = vector.multi_reduction <add>, %79, %cst_29 [1] : vector<8x32xf32> to vector<8xf32>
    %81 = vector.shape_cast %80 : vector<8xf32> to vector<8x1xf32>
    %82 = math.sqrt %81 : vector<8x1xf32>
    %cst_30 = arith.constant 0.176776692 : f32
    %83 = vector.broadcast %cst_30 : f32 to vector<8x1xf32>
    %84 = arith.mulf %82, %83 : vector<8x1xf32>
    %cst_31 = arith.constant 9.99999993E-9 : f32
    %85 = vector.broadcast %cst_31 : f32 to vector<8x1xf32>
    %86 = arith.addf %84, %85 : vector<8x1xf32>
    %87 = tpu.reciprocal %86 : vector<8x1xf32> -> vector<8x1xf32>
    %88 = vector.broadcast %78 : vector<1x32xf32> to vector<8x32xf32>
    %89 = arith.mulf %88, %76 : vector<8x32xf32>
    %90 = vector.broadcast %87 : vector<8x1xf32> to vector<8x32xf32>
    %91 = arith.mulf %89, %90 : vector<8x32xf32>
    %92 = arith.truncf %91 : vector<8x32xf32> to vector<8x32xbf16>
    %c0_32 = arith.constant 0 : index
    %c0_33 = arith.constant 0 : index
    %c0_34 = arith.constant 0 : index
    %93 = vector.load %arg8[%c0_32, %c0_33, %c0_34] : memref<1x32x128xbf16, #tpu.memory_space<vmem>>, vector<1x32x128xbf16>
    %94 = vector.shape_cast %93 : vector<1x32x128xbf16> to vector<32x128xbf16>
    %cst_35 = arith.constant dense<0.000000e+00> : vector<8x128xf32>
    %95 = tpu.matmul %92, %94, %cst_35 {dimension_numbers = #tpu.dot_dimension_numbers<[1], [0], [0], [1], [0, 0, 1, 1], [], []>} : vector<8x32xbf16>, vector<32x128xbf16>, vector<8x128xf32> -> vector<8x128xf32>
    %c0_36 = arith.constant 0 : index
    %c0_37 = arith.constant 0 : index
    %c0_38 = arith.constant 0 : index
    %96 = vector.load %arg9[%c0_36, %c0_37, %c0_38] : memref<1x1x128xf32, #tpu.memory_space<vmem>>, vector<1x1x128xf32>
    %97 = vector.shape_cast %96 : vector<1x1x128xf32> to vector<1x128xf32>
    %98 = vector.broadcast %97 : vector<1x128xf32> to vector<8x128xf32>
    %99 = arith.addf %95, %98 : vector<8x128xf32>
    %cst_39 = arith.constant 5.000000e-01 : f32
    %100 = vector.broadcast %cst_39 : f32 to vector<8x128xf32>
    %101 = arith.mulf %100, %99 : vector<8x128xf32>
    %cst_40 = arith.constant 1.41421354 : f32
    %102 = vector.broadcast %cst_40 : f32 to vector<8x128xf32>
    %103 = arith.divf %99, %102 : vector<8x128xf32>
    %104 = math.erf %103 : vector<8x128xf32>
    %cst_41 = arith.constant 1.000000e+00 : f32
    %105 = vector.broadcast %cst_41 : f32 to vector<8x128xf32>
    %106 = arith.addf %105, %104 : vector<8x128xf32>
    %107 = arith.mulf %101, %106 : vector<8x128xf32>
    %108 = arith.truncf %107 : vector<8x128xf32> to vector<8x128xbf16>
    %c0_42 = arith.constant 0 : index
    %c0_43 = arith.constant 0 : index
    %c0_44 = arith.constant 0 : index
    %109 = vector.load %arg10[%c0_42, %c0_43, %c0_44] : memref<1x128x32xbf16, #tpu.memory_space<vmem>>, vector<1x128x32xbf16>
    %110 = vector.shape_cast %109 : vector<1x128x32xbf16> to vector<128x32xbf16>
    %cst_45 = arith.constant dense<0.000000e+00> : vector<8x32xf32>
    %111 = tpu.matmul %108, %110, %cst_45 {dimension_numbers = #tpu.dot_dimension_numbers<[1], [0], [0], [1], [0, 0, 1, 1], [], []>} : vector<8x128xbf16>, vector<128x32xbf16>, vector<8x32xf32> -> vector<8x32xf32>
    %c0_46 = arith.constant 0 : index
    %c0_47 = arith.constant 0 : index
    %c0_48 = arith.constant 0 : index
    %112 = vector.load %arg11[%c0_46, %c0_47, %c0_48] : memref<1x1x32xf32, #tpu.memory_space<vmem>>, vector<1x1x32xf32>
    %113 = vector.shape_cast %112 : vector<1x1x32xf32> to vector<1x32xf32>
    %114 = vector.broadcast %113 : vector<1x32xf32> to vector<8x32xf32>
    %115 = arith.addf %111, %114 : vector<8x32xf32>
    %116 = arith.addf %91, %115 : vector<8x32xf32>
    %c0_49 = arith.constant 0 : index
    %c0_50 = arith.constant 0 : index
    %c0_51 = arith.constant 0 : index
    %117 = vector.load %arg12[%c0_49, %c0_50, %c0_51] : memref<1x1x32xf32, #tpu.memory_space<vmem>>, vector<1x1x32xf32>
    %118 = vector.shape_cast %117 : vector<1x1x32xf32> to vector<1x32xf32>
    %119 = arith.mulf %116, %116 : vector<8x32xf32>
    %cst_52 = arith.constant dense<0.000000e+00> : vector<8xf32>
    %120 = vector.multi_reduction <add>, %119, %cst_52 [1] : vector<8x32xf32> to vector<8xf32>
    %121 = vector.shape_cast %120 : vector<8xf32> to vector<8x1xf32>
    %122 = math.sqrt %121 : vector<8x1xf32>
    %cst_53 = arith.constant 0.176776692 : f32
    %123 = vector.broadcast %cst_53 : f32 to vector<8x1xf32>
    %124 = arith.mulf %122, %123 : vector<8x1xf32>
    %cst_54 = arith.constant 9.99999993E-9 : f32
    %125 = vector.broadcast %cst_54 : f32 to vector<8x1xf32>
    %126 = arith.addf %124, %125 : vector<8x1xf32>
    %127 = tpu.reciprocal %126 : vector<8x1xf32> -> vector<8x1xf32>
    %128 = vector.broadcast %118 : vector<1x32xf32> to vector<8x32xf32>
    %129 = arith.mulf %128, %116 : vector<8x32xf32>
    %130 = vector.broadcast %127 : vector<8x1xf32> to vector<8x32xf32>
    %131 = arith.mulf %129, %130 : vector<8x32xf32>
    %c0_55 = arith.constant 0 : index
    %c0_56 = arith.constant 0 : index
    %132 = vector.load %arg14[%c0_55, %c0_56] : memref<8x32xf32, #tpu.memory_space<vmem>>, vector<8x32xf32>
    tpu.vector_store %arg14[%c0_55, %c0_56], %131 {strides = array<i32>} : memref<8x32xf32, #tpu.memory_space<vmem>>, vector<8x32xf32>,
    %c1_i32 = arith.constant 1 : i32
    %133 = arith.cmpi eq, %arg1, %c1_i32 : i32
    %134 = arith.extui %133 : i1 to i32
    %c0_i32_57 = arith.constant 0 : i32
    %135 = arith.cmpi ne, %134, %c0_i32_57 : i32
    scf.if %135 {
      %c0_58 = arith.constant 0 : index
      %c0_59 = arith.constant 0 : index
      %136 = vector.load %arg13[%c0_58, %c0_59] : memref<8x32xf32, #tpu.memory_space<vmem>>, vector<8x32xf32>
      tpu.vector_store %arg13[%c0_58, %c0_59], %131 {strides = array<i32>} : memref<8x32xf32, #tpu.memory_space<vmem>>, vector<8x32xf32>,
    } else {
    }
    return
  }
  func.func @transform_0(%arg0: i32, %arg1: i32) -> (i32, i32) {
    %c0_i32 = arith.constant 0 : i32
    %c0_i32_0 = arith.constant 0 : i32
    return %arg0, %c0_i32 : i32, i32
  }
  func.func @transform_1(%arg0: i32, %arg1: i32) -> (i32, i32, i32) {
    %c0_i32 = arith.constant 0 : i32
    %c0_i32_0 = arith.constant 0 : i32
    %c0_i32_1 = arith.constant 0 : i32
    return %arg1, %c0_i32, %c0_i32_0 : i32, i32, i32
  }
  func.func @transform_2(%arg0: i32, %arg1: i32) -> (i32, i32, i32) {
    %c0_i32 = arith.constant 0 : i32
    %c0_i32_0 = arith.constant 0 : i32
    %c0_i32_1 = arith.constant 0 : i32
    return %arg1, %c0_i32, %c0_i32_0 : i32, i32, i32
  }
  func.func @transform_3(%arg0: i32, %arg1: i32) -> (i32, i32, i32) {
    %c0_i32 = arith.constant 0 : i32
    %c0_i32_0 = arith.constant 0 : i32
    %c0_i32_1 = arith.constant 0 : i32
    return %arg1, %c0_i32, %c0_i32_0 : i32, i32, i32
  }
  func.func @transform_4(%arg0: i32, %arg1: i32) -> (i32, i32, i32) {
    %c0_i32 = arith.constant 0 : i32
    %c0_i32_0 = arith.constant 0 : i32
    %c0_i32_1 = arith.constant 0 : i32
    return %arg1, %c0_i32, %c0_i32_0 : i32, i32, i32
  }
  func.func @transform_5(%arg0: i32, %arg1: i32) -> (i32, i32, i32) {
    %c0_i32 = arith.constant 0 : i32
    %c0_i32_0 = arith.constant 0 : i32
    %c0_i32_1 = arith.constant 0 : i32
    return %arg1, %c0_i32, %c0_i32_0 : i32, i32, i32
  }
  func.func @transform_6(%arg0: i32, %arg1: i32) -> (i32, i32, i32) {
    %c0_i32 = arith.constant 0 : i32
    %c0_i32_0 = arith.constant 0 : i32
    %c0_i32_1 = arith.constant 0 : i32
    return %arg1, %c0_i32, %c0_i32_0 : i32, i32, i32
  }
  func.func @transform_7(%arg0: i32, %arg1: i32) -> (i32, i32, i32) {
    %c0_i32 = arith.constant 0 : i32
    %c0_i32_0 = arith.constant 0 : i32
    %c0_i32_1 = arith.constant 0 : i32
    return %arg1, %c0_i32, %c0_i32_0 : i32, i32, i32
  }
  func.func @transform_8(%arg0: i32, %arg1: i32) -> (i32, i32, i32) {
    %c0_i32 = arith.constant 0 : i32
    %c0_i32_0 = arith.constant 0 : i32
    %c0_i32_1 = arith.constant 0 : i32
    return %arg1, %c0_i32, %c0_i32_0 : i32, i32, i32
  }
  func.func @transform_9(%arg0: i32, %arg1: i32) -> (i32, i32, i32) {
    %c0_i32 = arith.constant 0 : i32
    %c0_i32_0 = arith.constant 0 : i32
    %c0_i32_1 = arith.constant 0 : i32
    return %arg1, %c0_i32, %c0_i32_0 : i32, i32, i32
  }
  func.func @transform_10(%arg0: i32, %arg1: i32) -> (i32, i32, i32) {
    %c0_i32 = arith.constant 0 : i32
    %c0_i32_0 = arith.constant 0 : i32
    %c0_i32_1 = arith.constant 0 : i32
    return %arg1, %c0_i32, %c0_i32_0 : i32, i32, i32
  }
  func.func @transform_11(%arg0: i32, %arg1: i32) -> (i32, i32) {
    %c0_i32 = arith.constant 0 : i32
    %c0_i32_0 = arith.constant 0 : i32
    return %arg0, %c0_i32 : i32, i32
  }
}

</mosaic_0001>

<bundles_post_ra>
// kernel: tpu_custom_call.1
= control target key start
LH: loop header
LB: loop body
LE: loop exit
PB: predicated region body
PF: predicated region fallthrough
CT: control target
= control target key end

     0   :  { %s1999_s0 = inlined_call_operand.vmem [shape: f32[16,32], index: 0, kind: input, shape index: {}]   ;;  %s2000_s1 = inlined_call_operand.vmem [shape: bf16[2,32,96], index: 1, kind: input, shape index: {}]   ;;  %s2001_s2 = inlined_call_operand.vmem [shape: f32[2,1,96], index: 2, kind: input, shape index: {}]   ;;  %s2002_s3 = inlined_call_operand.vmem [shape: bf16[2,32,32], index: 3, kind: input, shape index: {}]   ;;  %s2003_s4 = inlined_call_operand.vmem [shape: f32[2,1,32], index: 4, kind: input, shape index: {}]   ;;  %s2004_s5 = inlined_call_operand.vmem [shape: f32[2,1,32], index: 5, kind: input, shape index: {}]   ;;  %s2005_s6 = inlined_call_operand.vmem [shape: bf16[2,32,128], index: 6, kind: input, shape index: {}]   ;;  %s2006_s7 = inlined_call_operand.vmem [shape: f32[2,1,128], index: 7, kind: input, shape index: {}]   ;;  %s2007_s8 = inlined_call_operand.vmem [shape: bf16[2,128,32], index: 8, kind: input, shape index: {}]   ;;  %s2008_s9 = inlined_call_operand.vmem [shape: f32[2,1,32], index: 9, kind: input, shape index: {}]   ;;  %s2009_s10 = inlined_call_operand.vmem [shape: f32[2,1,32], index: 10, kind: input, shape index: {}]   ;;  %s2010_s11 = inlined_call_operand.hbm [shape: f32[16,32], index: 11, kind: output, shape index: {}]  }
   0x1   :  { %2025 = sst [smem:[#allocation19_spill]] %s1999_s0 }
   0x2   :  { %2026 = sst [smem:[#allocation20_spill]] %s2000_s1 }
   0x3   :  { %2027 = sst [smem:[#allocation21_spill]] %s2001_s2 }
   0x4   :  { %2028 = sst [smem:[#allocation22_spill]] %s2002_s3 }
   0x5   :  { %2029 = sst [smem:[#allocation23_spill]] %s2010_s11 }
   0x6   :  { %16 = vsyncpa [#allocation5], 0 }
   0x7   :  { %18 = vsyncpa [#allocation5 + $0x1], 0  ;;  %s1734_s17 = smov 0   ;;  %s1736_s18 = smov 0  }
   0x8   :  { %s1738_s19 = smov 0   ;;  %s1740_s20 = smov 0  }
   0x9   :  { %s1742_s21 = smov 0   ;;  %s1744_s22 = smov 0  }
   0xa   :  { %s1746_s23 = smov 0   ;;  %s1748_s24 = smov 0  }
   0xb LB: > { %2030 = sst [smem:[#allocation7_spill]] %s1635_s17  ;;  %s1348_s25 = sadd.s32 4294967295, %s1663_s24   ;;  %s1663_s24 = sphi %s1748_s24, %s24_s24   ;;  %s1659_s23 = sphi %s1746_s23, %s2064_s23   ;;  %s1655_s22 = sphi %s1744_s22, %s2063_s22   ;;  %s1651_s21 = sphi %s1742_s21, %s2062_s21   ;;  %s1647_s20 = sphi %s1740_s20, %s2061_s20   ;;  %s1643_s19 = sphi %s1738_s19, %s2060_s19   ;;  %s1639_s18 = sphi %s1736_s18, %s2059_s18   ;;  %s1635_s17 = sphi %s1734_s17, %s2058_s17  }
   0xc   : > { %2031 = sst [smem:[#allocation8_spill]] %s1639_s18  ;;  %s1349_s26 = sadd.s32 4294967294, %s1663_s24  }
   0xd   : > { %2032 = sst [smem:[#allocation9_spill]] %s1643_s19  ;;  %s33_s27 = sadd.s32 1, %s1655_s22 }
   0xe   : > { %2033 = sst [smem:[#allocation10_spill]] %s1651_s21  ;;  %p34_p0 = scmp.ge.s32.totalorder %s33_s27, 2 }
   0xf   : > { %2034 = sst [smem:[#allocation11_spill]] %s1655_s22  ;;  %s36_s28 = sadd.s32 1, %s1659_s23 }
  0x10   : > { %2035 = sst [smem:[#allocation12_spill]] %s1659_s23  ;;  %p339_p1 = scmp.ne.s32.totalorder %s1643_s19, %s1639_s18 }
  0x11   : > { %2036 = sst [smem:[#allocation13_spill]] %s1663_s24  ;;  %p340_p2 = scmp.eq.s32.totalorder %s1348_s25, 3 }
  0x12   : > { %s2066_s27 = smov (%p34_p0, %s33_s27), 0  ;;  %s2068_s28 = smov (!%p34_p0, %s36_s28), %s1659_s23 }
  0x13   : > { %2037 = sst [smem:[#allocation14_spill]] %s2066_s27  ;;  %p1783_p3 = por %p340_p2, %p339_p1 }
  0x14   : > { %p345_p4 = scmp.ne.s32.totalorder %s1639_s18, %s1635_s17  ;;  %p38_p5 = scmp.ge.s32.totalorder %s2068_s28, 2 }
  0x15   : > { %s2038_s29 = scalar_select %p1783_p3, 1, 0 }
  0x16   : > { %p346_p6 = scmp.eq.s32.totalorder %s1349_s26, 3  ;;  %p1352_p7 = scmp.ge.s32.totalorder %s1663_s24, 1 }
  0x17   : > { %2039 = sst [smem:[#allocation15_spill]] %s2038_s29  ;;  %p439_p8 = scmp.lt.s32.totalorder %s1663_s24, 5 }
  0x18   : > { %s2070_s28 = smov (%p38_p5, %s2068_s28), 0  ;;  %p1793_p9 = por %p346_p6, %p345_p4 }
  0x19   : > { %2040 = sst [smem:[#allocation16_spill]] %s2070_s28  ;;  %p440_p10 = pnand %p1352_p7, %p439_p8 }
  0x1a   : > { %s2041_s30 = scalar_select %p1793_p9, 1, 0 }
  0x1b   : > { %s326_s12 = ssub.s32 %s1659_s23, %s2070_s28  ;;  %s329_s13 = sadd.s32 1, %s1643_s19 }
  0x1c   : > { %2042 = sst [smem:[#allocation17_spill]] %s2041_s30  ;;  %p327_p11 = scmp.eq.s32.totalorder %s326_s12, 0 }
  0x1d   : > { %443 = sbr.rel (%p440_p10) target bundleno = 1880 (0x758), region = 64  ;;  %s2012_s15 = sand.u32 (!%p440_p10), 1, %s1639_s18  }
  0x1e   : > { %s1801_s14 = scalar_select %p327_p11, %s1643_s19, %s329_s13  }
  0x1f   : > { %p516_p12 = scmp.lt.s32.totalorder (!%p440_p10), %s1651_s21, 1  ;;  %s1807_s16 = sshll.u32 (!%p440_p10), %s2012_s15, 3 }
  0x20   : > { %2043 = sst [smem:[#allocation18_spill]] %s1801_s14  ;;  %p520_p13 = scmp.lt.s32.totalorder (!%p440_p10), %s1647_s20, 1 }
  0x21   : > { %s2044_s0 = sld [smem:[#allocation19_spill]] (!%p440_p10)  ;;  %p1363_p0 = scmp.ne.s32.totalorder (!%p440_p10), %s1647_s20, 0 }
  0x22   : > { %s517_s25 = scalar_select %p516_p12, %s1651_s21, 1 }
  0x23   : > { %s1812_s26 = scalar_select %p520_p13, %s1647_s20, 1 }
  0x24   : > { %s1354_s12 = sshll.u32 %s517_s25, 3  ;;  %s2045_s1 = sld [smem:[#allocation20_spill]] }
  0x25   : > { %s1437_s15 = sshll.u32 %s1812_s26, 4  ;;  %s2046_s2 = sld [smem:[#allocation21_spill]] }
  0x26   : > { %s2047_s3 = sld [smem:[#allocation22_spill]]  ;;  %s535_s21 = scalar_lea.vmem %s2003_s4, %s1812_s26 }
  0x27   : > { %s519_s27 = scalar_lea.vmem %s2044_s0, %s1354_s12  ;;  %s1841_s23 = scalar_lea.vmem %s2005_s6, %s1437_s15 }
  0x28   : > { %s1440_s11 = sshll.u32 %s1812_s26, 6  ;;  %s554_s28 = scalar_lea.vmem %s2008_s9, %s1812_s26 }
  0x29   : > { %s557_s0 = scalar_lea.vmem %s2009_s10, %s1812_s26  ;;  %562 = sbr.rel (%p1363_p0) target bundleno = 48 (0x30), region = 68 }
  0x2a   : > { %s524_s14 = scalar_lea.vmem %s2045_s1, %s1437_s15  ;;  %s546_s1 = scalar_lea.vmem %s2006_s7, %s1812_s26 }
  0x2b   : > { %s527_s17 = scalar_lea.vmem %s2046_s2, %s1812_s26 }
  0x2c   : > { %s1828_s29 = scalar_lea.vmem %s2047_s3, %s1437_s15  ;;  %s1851_s3 = scalar_lea.vmem %s2007_s8, %s1440_s11 }
  0x2d   : > { %s515_s15 = scalar_lea.vmem [#allocation4], %s1807_s16 }
  0x2e   : > { %v563_v0 = vld [vmem:[%s519_s27] sm:$0xff]  ;;  %vm564_vm0 = vcmask 261120  }
  0x2f   : > { %565 = vst.msk [vmem:[#allocation2] sm:$0xff] %vm564_vm0, %v563_v0 }
  0x30 PF: > { %v1442_v1 = vld [vmem:[%s524_s14 + $0x8] sm:$0xff]  ;;  %v1441_v2 = vld [vmem:[%s524_s14] sm:$0xff]  ;;  %vm588_vm1 = vcmask 261120   ;;  %s1665_s2 = smov 104   ;;  %s1666_s27 = smov 120   ;;  %vm624_vm2 = vcmask 64512  }
  0x31   : > { %598 = vmatpush.bf16.msra.mxu0 %v1442_v1  ;;  %v1535_v5 = vld [vmem:[%s527_s17] ss:$0 sm:$0xff]  ;;  %s1667_s14 = smov 112   ;;  %s1668_s13 = smov 96   ;;  %vm769_vm3 = vcmask 1043456   ;;  %vm854_vm4 = vcmask 130112  }
  0x32   : > { %s1669_s17 = smov 64   ;;  %s1670_s22 = smov 16   ;;  %vm860_vm5 = vcmask 195712   ;;  %vm866_vm6 = vcmask 261312  }
  0x33   : > { %s1671_s19 = smov 8   ;;  %s1672_s30 = smov 24  }
  0x34   : > { %p1432_p1 = scmp.ne.s32.totalorder %s1647_s20, 1 }
  0x35   : > { %599 = vmatpush.bf16.msra.mxu0 %v1441_v2 }
  0x36   : > { %v1863_v3 = vld [vmem:[#allocation2] sm:$0xff] }
  0x37   : > { %v567_v4 = vpack.c.bf16 %v1863_v3, %v1863_v3 }
  0x39   : > { %1372 = vmatmul.msk.bf16.vlgmr.msra.gmra.mxu0 %vm588_vm1, %v567_v4 }
  0xb6   : > { %v601_v6 = vpop.f32.mrf.mxu0 }
  0xb7   : > { %v602_v7 = vadd.f32 %v1535_v5, %v601_v6 }
  0xb9   : > { %612 = vrot.lane.b32.xlu1 %v602_v7, %s1665_s2  ;;  %606 = vrot.lane.b32.xlu0 %v602_v7, %s1666_s27  ;;  %v615_v9 = vpack.c.bf16 %v602_v7, %v602_v7 }
  0xbb   : > { %v620_v10 = vunpack.c.l.b16 %v615_v9 }
  0xbd   : > { %v1868_v11 = vpack.c.b16 %v620_v10, %v620_v10 }
  0xbe   : > { %v603_v8 = vpop.f32.mrf.mxu0 }
  0xc1   : > { %609 = vrot.lane.b32.xlu0 %v602_v7, %s1667_s14 }
  0xc9   : > { %622 = vrot.lane.b32.xlu0 %v1868_v11, %s1668_s13 }
 0x12b   : > { %v607_v12 = vpop.permute.xlu0 %606  ;;  %v613_v18 = vpop.permute.xlu1 %612 }
 0x12c   : > { %v616_v13 = vpack.c.bf16 %v607_v12, %v607_v12  ;;  %v618_v20 = vpack.c.bf16 %v613_v18, %v613_v18 }
 0x12e   : > { %v645_v14 = vunpack.c.l.b16 %v616_v13  ;;  %v693_v23 = vunpack.c.l.b16 %v618_v20 }
 0x130   : > { %v1871_v15 = vpack.c.b16 %v645_v14, %v645_v14  ;;  %v694_v25 = vpack.c.b16 %v693_v23, %v693_v23 }
 0x132   : > { %647 = vrot.lane.b32.xlu1 %v1871_v15, %s1668_s13 }
 0x133   : > { %v610_v16 = vpop.permute.xlu0 %609 }
 0x134   : > { %v617_v17 = vpack.c.bf16 %v610_v16, %v610_v16 }
 0x136   : > { %v669_v19 = vunpack.c.l.b16 %v617_v17 }
 0x138   : > { %v670_v21 = vpack.c.b16 %v669_v19, %v669_v19 }
 0x13a   : > { %671 = vrot.lane.b32.xlu2 %v670_v21, %s1668_s13 }
 0x13b   : > { %v623_v22 = vpop.permute.xlu0 %622 }
 0x13c   : > { %v629_v24 = vsel %vm624_vm2, %v623_v22, 0 }
 0x13d   : > { %638 = vmatpush.bf16.xpose.msra.mxu1 %v629_v24 }
 0x142   : > { %695 = vrot.lane.b32.xlu2 %v694_v25, %s1668_s13 }
 0x144   : > { %1373 = vmatmul.msk.bf16.vlgmr.msra.gmra.mxu1 %vm624_vm2, %v615_v9 }
 0x194   : > { %v672_v26 = vpop.permute.xlu2 %671 }
 0x195   : > { %v677_v27 = vsel %vm624_vm2, %v672_v26, 0 }
 0x196   : > { %686 = vmatpush.bf16.xpose.msra.mxu3 %v677_v27 }
 0x19c   : > { %v696_v28 = vpop.permute.xlu2 %695 }
 0x19d   : > { %1375 = vmatmul.msk.bf16.vlgmr.msra.gmra.mxu3 %vm624_vm2, %v617_v17  ;;  %v701_v29 = vsel %vm624_vm2, %v696_v28, 0 }
 0x19e   : > { %710 = vmatpush.bf16.xpose.msrb.mxu0 %v701_v29 }
 0x1a4   : > { %v648_v30 = vpop.permute.xlu1 %647 }
 0x1a5   : > { %1376 = vmatmul.msk.bf16.vlgmr.msrb.gmra.mxu0 %vm624_vm2, %v618_v20  ;;  %v653_v31 = vsel %vm624_vm2, %v648_v30, 0 }
 0x1a6   : > { %662 = vmatpush.bf16.xpose.msra.mxu2 %v653_v31 }
 0x1ad   : > { %1374 = vmatmul.msk.bf16.vlgmr.msra.gmra.mxu2 %vm624_vm2, %v616_v13 }
 0x1c1   : > { %v640_v32 = vpop.f32.mrf.mxu1 }
 0x1c2   : > { %v716_v39 = vsel %vm624_vm2, %v640_v32, -inf }
 0x1c9   : > { %v642_v33 = vpop.f32.mrf.mxu1 }
 0x1ca   : > { %v1444_v33 = vld [vmem:[%s1828_s29 + $0x8] sm:$0xff] }
 0x220   : > { %v688_v34 = vpop.f32.mrf.mxu3 }
 0x221   : > { %v722_v35 = vsel %vm624_vm2, %v688_v34, -inf }
 0x222   : > { %723 = vmax.xlane.f32.xlu2 %v722_v35  ;;  %v712_v36 = vpop.f32.mrf.mxu0 }
 0x223   : > { %v725_v37 = vsel %vm624_vm2, %v712_v36, -inf }
 0x224   : > { %726 = vmax.xlane.f32.xlu0 %v725_v37 }
 0x228   : > { %v690_v38 = vpop.f32.mrf.mxu3 }
 0x22a   : > { %v714_v40 = vpop.f32.mrf.mxu0  ;;  %717 = vmax.xlane.f32.xlu2 %v716_v39 }
 0x22b   : > { %v1536_v40 = vld [vmem:[%s535_s21] ss:$0 sm:$0xff] }
 0x230   : > { %v664_v41 = vpop.f32.mrf.mxu2 }
 0x231   : > { %v719_v42 = vsel %vm624_vm2, %v664_v41, -inf }
 0x232   : > { %720 = vmax.xlane.f32.xlu1 %v719_v42 }
 0x238   : > { %v666_v43 = vpop.f32.mrf.mxu2 }
 0x295   : > { %v724_v44 = vpop.xlane.xlu2 %723 }
 0x296   : > { %v730_v45 = vsub.f32 %v688_v34, %v724_v44  ;;  %v1443_v34 = vld [vmem:[%s1828_s29] sm:$0xff] }
 0x297   : > { %v727_v46 = vpop.xlane.xlu0 %726 }
 0x298   : > { %v736_v47 = vmul.f32 1.442695, %v730_v45  ;;  %v731_v48 = vsub.f32 %v712_v36, %v727_v46 }
 0x29a   : > { %1541 = vpow2.f32 %v736_v47  ;;  %v738_v49 = vmul.f32 1.442695, %v731_v48  ;;  %v1446_v47 = vld [vmem:[%s1841_s23 + $0x8] sm:$0xff]  ;;  %v1445_v48 = vld [vmem:[%s1841_s23] sm:$0xff]  ;;  %s2048_s23 = scalar_lea.vmem %s2004_s5, %s1812_s26 }
 0x29c   : > { %1543 = vpow2.f32 %v738_v49 }
 0x29d   : > { %v718_v59 = vpop.xlane.xlu2 %717 }
 0x29e   : > { %v728_v60 = vsub.f32 %v640_v32, %v718_v59 }
 0x2a0   : > { %v1542_v50 = vpop.eup %1541  ;;  %v732_v61 = vmul.f32 1.442695, %v728_v60 }
 0x2a1   : > { %v746_v51 = vsel %vm624_vm2, %v1542_v50, 0.0 }
 0x2a2   : > { %v1544_v52 = vpop.eup %1543  ;;  %747 = vadd.xlane.f32.xlu2 %v746_v51 }
 0x2a3   : > { %v749_v53 = vsel %vm624_vm2, %v1544_v52, 0.0 }
 0x2a4   : > { %750 = vadd.xlane.f32.xlu0 %v749_v53 }
 0x2a5   : > { %v721_v54 = vpop.xlane.xlu1 %720 }
 0x2a6   : > { %v729_v55 = vsub.f32 %v664_v41, %v721_v54 }
 0x2a8   : > { %v734_v56 = vmul.f32 1.442695, %v729_v55 }
 0x2aa   : > { %1545 = vpow2.f32 %v734_v56 }
 0x2ab   : > { %1547 = vpow2.f32 %v732_v61 }
 0x2b0   : > { %v1546_v57 = vpop.eup %1545 }
 0x2b1   : > { %v743_v58 = vsel %vm624_vm2, %v1546_v57, 0.0  ;;  %v1548_v62 = vpop.eup %1547 }
 0x2b2   : > { %744 = vadd.xlane.f32.xlu1 %v743_v58  ;;  %v740_v63 = vsel %vm624_vm2, %v1548_v62, 0.0 }
 0x2b8   : > { %828 = vrot.lane.b32.xlu0 %v694_v25, %s1669_s17 }
 0x2ba   : > { %807 = vrot.lane.b32.xlu2 %v670_v21, %s1669_s17 }
 0x2c0   : > { %764 = vrot.lane.b32.xlu0 %v1868_v11, %s1669_s17 }
 0x2cb   : > { %786 = vrot.lane.b32.xlu1 %v1871_v15, %s1669_s17 }
 0x2f5   : > { %741 = vadd.xlane.f32.xlu1 %v740_v63 }
 0x315   : > { %v748_v0 = vpop.xlane.xlu2 %747 }
 0x316   : > { %1549 = vrcp.f32 %v748_v0 }
 0x317   : > { %v751_v4 = vpop.xlane.xlu0 %750 }
 0x318   : > { %1551 = vrcp.f32 %v751_v4 }
 0x31c   : > { %v1550_v1 = vpop.eup %1549 }
 0x31d   : > { %v758_v2 = vmul.f32 %v1550_v1, %v1542_v50  ;;  %v808_v5 = vpop.permute.xlu2 %807  ;;  %v1537_v1 = vld [vmem:[%s2048_s23] ss:$0 sm:$0xff] }
 0x31e   : > { %v813_v6 = vsel %vm769_vm3, %v808_v5, 0  ;;  %v1552_v8 = vpop.eup %1551 }
 0x31f   : > { %822 = vmatpush.bf16.msrb.mxu3 %v813_v6  ;;  %v762_v7 = vpack.c.bf16 %v758_v2, %v758_v2  ;;  %v759_v9 = vmul.f32 %v1552_v8, %v1544_v52 }
 0x321   : > { %v763_v12 = vpack.c.bf16 %v759_v9, %v759_v9 }
 0x322   : > { %1379 = vmatmul.msk.bf16.vlgmr.msrb.gmra.mxu3 %vm624_vm2, %v762_v7 }
 0x325   : > { %v745_v13 = vpop.xlane.xlu1 %744 }
 0x326   : > { %1553 = vrcp.f32 %v745_v13 }
 0x32a   : > { %v829_v10 = vpop.permute.xlu0 %828 }
 0x32b   : > { %v834_v11 = vsel %vm769_vm3, %v829_v10, 0 }
 0x32c   : > { %843 = vmatpush.bf16.msra.mxu0 %v834_v11  ;;  %v1554_v16 = vpop.eup %1553 }
 0x32d   : > { %v757_v17 = vmul.f32 %v1554_v16, %v1546_v57 }
 0x32f   : > { %1380 = vmatmul.msk.bf16.vlgmr.msra.gmra.mxu0 %vm624_vm2, %v763_v12  ;;  %v761_v20 = vpack.c.bf16 %v757_v17, %v757_v17  ;;  %v1673_v12 = vmov 1.4142135   ;;  %v1454_v17 = vld [vmem:[%s1851_s3 + $0x38] sm:$0xff] }
 0x330   : > { %1102 = vmatpush.bf16.msra.mxu3 %v1454_v17 }
 0x332   : > { %v765_v14 = vpop.permute.xlu0 %764 }
 0x333   : > { %v771_v15 = vsel %vm769_vm3, %v765_v14, 0 }
 0x334   : > { %780 = vmatpush.bf16.msrb.mxu1 %v771_v15 }
 0x338   : > { %899 = vmatpush.bf16.msra.mxu1 %v1444_v33 }
 0x33c   : > { %900 = vmatpush.bf16.msra.mxu1 %v1443_v34 }
 0x33d   : > { %v787_v18 = vpop.permute.xlu1 %786 }
 0x33e   : > { %v792_v19 = vsel %vm769_vm3, %v787_v18, 0 }
 0x33f   : > { %801 = vmatpush.bf16.msrb.mxu2 %v792_v19  ;;  %v1453_v19 = vld [vmem:[%s1851_s3 + $0x30] sm:$0xff] }
 0x340   : > { %1103 = vmatpush.bf16.msra.mxu3 %v1453_v19 }
 0x342   : > { %1378 = vmatmul.msk.bf16.vlgmr.msrb.gmra.mxu2 %vm624_vm2, %v761_v20  ;;  %v1538_v20 = vld [vmem:[%s546_s1] ss:$0 sm:$0xff] }
 0x343   : > { %975 = vmatpush.bf16.msra.mxu2 %v1446_v47 }
 0x347   : > { %976 = vmatpush.bf16.msra.mxu2 %v1445_v48 }
 0x368   : > { %v742_v21 = vpop.xlane.xlu1 %741 }
 0x369   : > { %1555 = vrcp.f32 %v742_v21 }
 0x36f   : > { %v1556_v22 = vpop.eup %1555 }
 0x370   : > { %v756_v23 = vmul.f32 %v1556_v22, %v1548_v62 }
 0x372   : > { %v760_v24 = vpack.c.bf16 %v756_v23, %v756_v23  ;;  %v1452_v23 = vld [vmem:[%s1851_s3 + $0x28] sm:$0xff] }
 0x373   : > { %1104 = vmatpush.bf16.msra.mxu3 %v1452_v23 }
 0x374   : > { %1377 = vmatmul.msk.bf16.vlgmr.msrb.gmra.mxu1 %vm624_vm2, %v760_v24 }
 0x3a5   : > { %v824_v25 = vpop.f32.mrf.mxu3 }
 0x3a6   : > { %857 = vrot.lane.b32.xlu0 %v824_v25, %s1670_s22 }
 0x3ac   : > { %v845_v26 = vpop.f32.mrf.mxu0 }
 0x3ad   : > { %v826_v27 = vpop.f32.mrf.mxu3 }
 0x3b4   : > { %v847_v28 = vpop.f32.mrf.mxu0 }
 0x3c5   : > { %v803_v29 = vpop.f32.mrf.mxu2 }
 0x3c6   : > { %851 = vrot.lane.b32.xlu2 %v803_v29, %s1671_s19 }
 0x3cd   : > { %v805_v30 = vpop.f32.mrf.mxu2 }
 0x3ce   : > { %863 = vrot.lane.b32.xlu2 %v845_v26, %s1672_s30  ;;  %v1451_v26 = vld [vmem:[%s1851_s3 + $0x20] sm:$0xff]  ;;  %v1450_v30 = vld [vmem:[%s1851_s3 + $0x18] sm:$0xff] }
 0x3cf   : > { %1105 = vmatpush.bf16.msra.mxu3 %v1451_v26 }
 0x3d3   : > { %1106 = vmatpush.bf16.msra.mxu3 %v1450_v30 }
 0x3f1   : > { %v782_v31 = vpop.f32.mrf.mxu1 }
 0x3f2   : > { %849 = vst.msk [vmem:[#allocation3] sm:$0xff] %vm624_vm2, %v782_v31 }
 0x3f9   : > { %v784_v32 = vpop.f32.mrf.mxu1 }
 0x418   : > { %v858_v36 = vpop.permute.xlu0 %857 }
 0x420   : > { %v852_v35 = vpop.permute.xlu2 %851 }
 0x421   : > { %855 = vst.msk [vmem:[#allocation3] sm:$0xff] %vm854_vm4, %v852_v35  ;;  %v1449_v35 = vld [vmem:[%s1851_s3 + $0x10] sm:$0xff] }
 0x422   : > { %861 = vst.msk [vmem:[#allocation3] sm:$0xff] %vm860_vm5, %v858_v36  ;;  %1107 = vmatpush.bf16.msra.mxu3 %v1449_v35 }
 0x428   : > { %v864_v37 = vpop.permute.xlu2 %863 }
 0x429   : > { %867 = vst.msk [vmem:[#allocation3] sm:$0xff] %vm866_vm6, %v864_v37 }
 0x430   : > { %v868_v38 = vld [vmem:[#allocation3] sm:$0xff] }
 0x431   : > { %v869_v39 = vpack.c.bf16 %v868_v38, %v868_v38 }
 0x433   : > { %1389 = vmatmul.msk.bf16.vlgmr.msra.gmra.mxu1 %vm588_vm1, %v869_v39 }
 0x4b0   : > { %v902_v41 = vpop.f32.mrf.mxu1 }
 0x4b1   : > { %v903_v42 = vadd.f32 %v1536_v40, %v902_v41  ;;  %v1448_v40 = vld [vmem:[%s1851_s3 + $0x8] sm:$0xff] }
 0x4b2   : > { %1108 = vmatpush.bf16.msra.mxu3 %v1448_v40 }
 0x4b3   : > { %v906_v43 = vadd.f32 %v903_v42, %v1863_v3 }
 0x4b5   : > { %v908_v44 = vmul.f32 %v906_v43, %v906_v43  ;;  %v943_v7 = vmul.f32 %v1537_v1, %v906_v43 }
 0x4b7   : > { %v909_v45 = vsel %vm588_vm1, %v908_v44, 0.0  ;;  %v1447_v44 = vld [vmem:[%s1851_s3] sm:$0xff] }
 0x4b8   : > { %v904_v46 = vpop.f32.mrf.mxu1  ;;  %910 = vadd.xlane.f32.xlu0 %v909_v45  ;;  %1109 = vmatpush.bf16.msra.mxu3 %v1447_v44 }
 0x52b   : > { %v911_v49 = vpop.xlane.xlu0 %910 }
 0x52c   : > { %1557 = vrsqrt.f32 %v911_v49  ;;  %vm919_vm7 = vcmp.eq.f32.partialorder %v911_v49, inf  ;;  %v922_v3 = vand.u32 2147483648, %v911_v49  ;;  %vm921_vm8 = vcmp.eq.f32.partialorder %v911_v49, 0.0 }
 0x532   : > { %v1558_v50 = vpop.eup %1557 }
 0x533   : > { %v913_v51 = vmul.f32 %v1558_v50, %v911_v49 }
 0x535   : > { %v914_v52 = vmul.f32 %v1558_v50, %v913_v51 }
 0x537   : > { %v915_v53 = vmul.f32 0.5, %v914_v52 }
 0x539   : > { %v916_v54 = vsub.f32 1.5, %v915_v53 }
 0x53b   : > { %v917_v55 = vmul.f32 %v1558_v50, %v916_v54 }
 0x53d   : > { %v918_v56 = vmul.f32 %v917_v55, %v911_v49 }
 0x53f   : > { %v920_v57 = vsel %vm919_vm7, %v911_v49, %v918_v56 }
 0x540   : > { %v923_v58 = vsel %vm921_vm8, %v922_v3, %v920_v57 }
 0x541   : > { %v924_v59 = vmul.f32 0.17677669, %v923_v58 }
 0x543   : > { %v925_v60 = vadd.f32 1e-08, %v924_v59 }
 0x545   : > { %1559 = vrcp.f32 %v925_v60  ;;  %v937_v0 = vand.u32 2147483648, %v925_v60  ;;  %v935_v4 = vand.u32 2147483647, %v925_v60  ;;  %vm931_vm10 = vweird.f32 %v925_v60 }
 0x546   : > { %1561 = vrcp.f32 %v1673_v12 }
 0x547   : > { %v938_v6 = vor.u32 1.1754944e-38, %v937_v0  ;;  %vm936_vm12 = vcmp.eq.f32.partialorder %v935_v4, 8.507059e+37 }
 0x54b   : > { %v1560_v61 = vpop.eup %1559 }
 0x54c   : > { %v927_v62 = vmul.f32 %v1560_v61, %v925_v60  ;;  %vm932_vm9 = vweird.f32 %v1560_v61  ;;  %v1562_v13 = vpop.eup %1561 }
 0x54d   : > { %vm933_vm11 = vmor %vm931_vm10, %vm932_vm9  ;;  %v984_v14 = vmul.f32 1.4142135, %v1562_v13  ;;  %vm988_vm13 = vweird.f32 %v1562_v13 }
 0x54e   : > { %v928_v63 = vsub.f32 1.0, %v927_v62 }
 0x54f   : > { %v985_v15 = vsub.f32 1.0, %v984_v14 }
 0x550   : > { %v929_v2 = vmul.f32 %v1560_v61, %v928_v63 }
 0x551   : > { %v986_v16 = vmul.f32 %v1562_v13, %v985_v15 }
 0x552   : > { %v930_v5 = vadd.f32 %v1560_v61, %v929_v2 }
 0x553   : > { %v987_v18 = vadd.f32 %v1562_v13, %v986_v16 }
 0x554   : > { %v934_v8 = vsel %vm933_vm11, %v1560_v61, %v930_v5 }
 0x555   : > { %v939_v9 = vsel %vm936_vm12, %v938_v6, %v934_v8  ;;  %v989_v22 = vsel %vm988_vm13, %v1562_v13, %v987_v18 }
 0x556   : > { %v1918_v10 = vmul.f32 %v943_v7, %v939_v9  ;;  %v1539_v7 = vld [vmem:[%s554_s28] ss:$0 sm:$0xff] }
 0x558   : > { %v945_v11 = vpack.c.bf16 %v1918_v10, %v1918_v10 }
 0x55a   : > { %1398 = vmatmul.msk.bf16.vlgmr.msra.gmra.mxu2 %vm588_vm1, %v945_v11 }
 0x5dd   : > { %v978_v21 = vpop.f32.mrf.mxu2 }
 0x5de   : > { %v979_v24 = vadd.f32 %v1538_v20, %v978_v21 }
 0x5e0   : > { %v990_v25 = vmul.f32 %v989_v22, %v979_v24  ;;  %v982_v2 = vmul.f32 0.5, %v979_v24 }
 0x5e2   : > { %v991_v27 = vmul.f32 %v990_v25, %v990_v25 }
 0x5e4   : > { %v992_v28 = vmin.f32 %v991_v27, 16.0 }
 0x5e5   : > { %v980_v29 = vpop.f32.mrf.mxu2 }
 0x5e6   : > { %v993_v31 = vmul.f32 2.1237322e-06, %v992_v28  ;;  %v1004_v32 = vmul.f32 3.8918573e-05, %v992_v28 }
 0x5e8   : > { %v994_v33 = vadd.f32 0.00028619796, %v993_v31  ;;  %v1005_v34 = vadd.f32 0.001143296, %v1004_v32  ;;  %v1540_v31 = vld [vmem:[%s557_s0] ss:$0 sm:$0xff] }
 0x5ea   : > { %v995_v36 = vmul.f32 %v994_v33, %v992_v28  ;;  %v1006_v37 = vmul.f32 %v1005_v34, %v992_v28 }
 0x5ec   : > { %v1007_v38 = vadd.f32 0.014752088, %v1006_v37  ;;  %v996_v39 = vadd.f32 0.0036580483, %v995_v36 }
 0x5ee   : > { %v1008_v41 = vmul.f32 %v1007_v38, %v992_v28  ;;  %v997_v43 = vmul.f32 %v996_v39, %v992_v28 }
 0x5f0   : > { %v1009_v42 = vadd.f32 0.112945676, %v1008_v41  ;;  %v998_v47 = vadd.f32 0.05243302, %v997_v43 }
 0x5f2   : > { %v1010_v45 = vmul.f32 %v1009_v42, %v992_v28  ;;  %v999_v50 = vmul.f32 %v998_v47, %v992_v28 }
 0x5f4   : > { %v1011_v46 = vadd.f32 0.4994258, %v1010_v45  ;;  %v1000_v51 = vadd.f32 0.18741608, %v999_v50 }
 0x5f6   : > { %v1012_v48 = vmul.f32 %v1011_v46, %v992_v28  ;;  %v1001_v53 = vmul.f32 %v1000_v51, %v992_v28 }
 0x5f8   : > { %v1013_v49 = vadd.f32 1.0, %v1012_v48  ;;  %v1002_v3 = vadd.f32 1.1283791, %v1001_v53 }
 0x5fa   : > { %1563 = vrcp.f32 %v1013_v49  ;;  %v1025_v56 = vand.u32 2147483648, %v1013_v49  ;;  %v1023_v58 = vand.u32 2147483647, %v1013_v49  ;;  %vm1019_vm15 = vweird.f32 %v1013_v49 }
 0x5fb   : > { %v1003_v61 = vmul.f32 %v1002_v3, %v990_v25 }
 0x5fc   : > { %v1026_v60 = vor.u32 1.1754944e-38, %v1025_v56  ;;  %vm1024_vm2 = vcmp.eq.f32.partialorder %v1023_v58, 8.507059e+37 }
 0x600   : > { %v1564_v52 = vpop.eup %1563 }
 0x601   : > { %v1015_v54 = vmul.f32 %v1564_v52, %v1013_v49  ;;  %vm1020_vm14 = vweird.f32 %v1564_v52 }
 0x602   : > { %vm1021_vm0 = vmor %vm1019_vm15, %vm1020_vm14 }
 0x603   : > { %v1016_v55 = vsub.f32 1.0, %v1015_v54 }
 0x605   : > { %v1017_v57 = vmul.f32 %v1564_v52, %v1016_v55 }
 0x607   : > { %v1018_v59 = vadd.f32 %v1564_v52, %v1017_v57 }
 0x609   : > { %v1022_v62 = vsel %vm1021_vm0, %v1564_v52, %v1018_v59 }
 0x60a   : > { %v1027_v63 = vsel %vm1024_vm2, %v1026_v60, %v1022_v62 }
 0x60b   : > { %v1028_v0 = vmul.f32 %v1027_v63, %v1003_v61 }
 0x60d   : > { %v1399_v1 = vclamps-f32 %v1028_v0, 1.0 }
 0x60f   : > { %v1031_v4 = vadd.f32 1.0, %v1399_v1 }
 0x611   : > { %v1032_v5 = vmul.f32 %v1031_v4, %v982_v2 }
 0x613   : > { %v1033_v6 = vpack.c.bf16 %v1032_v5, %v1032_v5 }
 0x615   : > { %1110 = vmatmul.bf16.vlgmr.msra.gmra.mxu3 %v1033_v6 }
 0x698   : > { %v1111_v8 = vpop.f32.mrf.mxu3 }
 0x699   : > { %v1112_v9 = vadd.f32 %v1539_v7, %v1111_v8 }
 0x69b   : > { %v1115_v11 = vadd.f32 %v1112_v9, %v1918_v10 }
 0x69d   : > { %v1117_v12 = vmul.f32 %v1115_v11, %v1115_v11  ;;  %v1152_v36 = vmul.f32 %v1540_v31, %v1115_v11 }
 0x69f   : > { %v1118_v13 = vsel %vm588_vm1, %v1117_v12, 0.0 }
 0x6a0   : > { %v1113_v14 = vpop.f32.mrf.mxu3  ;;  %1119 = vadd.xlane.f32.xlu2 %v1118_v13 }
 0x713   : > { %v1120_v15 = vpop.xlane.xlu2 %1119 }
 0x714   : > { %1565 = vrsqrt.f32 %v1120_v15  ;;  %vm1128_vm3 = vcmp.eq.f32.partialorder %v1120_v15, inf  ;;  %v1131_v23 = vand.u32 2147483648, %v1120_v15  ;;  %vm1130_vm4 = vcmp.eq.f32.partialorder %v1120_v15, 0.0 }
 0x71a   : > { %v1566_v16 = vpop.eup %1565 }
 0x71b   : > { %v1122_v17 = vmul.f32 %v1566_v16, %v1120_v15 }
 0x71d   : > { %v1123_v18 = vmul.f32 %v1566_v16, %v1122_v17 }
 0x71f   : > { %v1124_v19 = vmul.f32 0.5, %v1123_v18 }
 0x721   : > { %v1125_v20 = vsub.f32 1.5, %v1124_v19 }
 0x723   : > { %v1126_v21 = vmul.f32 %v1566_v16, %v1125_v20 }
 0x725   : > { %v1127_v22 = vmul.f32 %v1126_v21, %v1120_v15 }
 0x727   : > { %v1129_v24 = vsel %vm1128_vm3, %v1120_v15, %v1127_v22 }
 0x728   : > { %v1132_v10 = vsel %vm1130_vm4, %v1131_v23, %v1129_v24 }
 0x729   : > { %v1133_v25 = vmul.f32 0.17677669, %v1132_v10 }
 0x72b   : > { %v1134_v26 = vadd.f32 1e-08, %v1133_v25 }
 0x72d   : > { %1567 = vrcp.f32 %v1134_v26  ;;  %v1146_v30 = vand.u32 2147483648, %v1134_v26  ;;  %v1144_v33 = vand.u32 2147483647, %v1134_v26  ;;  %vm1140_vm6 = vweird.f32 %v1134_v26 }
 0x72f   : > { %v1147_v35 = vor.u32 1.1754944e-38, %v1146_v30  ;;  %vm1145_vm8 = vcmp.eq.f32.partialorder %v1144_v33, 8.507059e+37 }
 0x733   : > { %v1568_v27 = vpop.eup %1567 }
 0x734   : > { %v1136_v28 = vmul.f32 %v1568_v27, %v1134_v26  ;;  %vm1141_vm5 = vweird.f32 %v1568_v27 }
 0x735   : > { %vm1142_vm7 = vmor %vm1140_vm6, %vm1141_vm5 }
 0x736   : > { %v1137_v29 = vsub.f32 1.0, %v1136_v28 }
 0x738   : > { %v1138_v32 = vmul.f32 %v1568_v27, %v1137_v29 }
 0x73a   : > { %v1139_v34 = vadd.f32 %v1568_v27, %v1138_v32 }
 0x73c   : > { %v1143_v37 = vsel %vm1142_vm7, %v1568_v27, %v1139_v34  ;;  %1158 = sbr.rel (%p1432_p1) target bundleno = 1858 (0x742), region = 72 }
 0x73d   : > { %v1148_v38 = vsel %vm1145_vm8, %v1147_v35, %v1143_v37 }
 0x73e   : > { %v1153_v39 = vmul.f32 %v1152_v36, %v1148_v38 }
 0x740   : > { %1154 = vst.msk [vmem:[#allocation2] sm:$0xff] %vm588_vm1, %v1153_v39 }
 0x741   : > { %1159 = vst.msk [vmem:[%s515_s15] sm:$0xff] %vm588_vm1, %v1153_v39 }
 0x742 PF: > { %s2049_s26 = sld [smem:[#allocation10_spill]]  ;;  %s1173_s19 = sshll.u32 %s515_s15, 4  ;;  %s1174_s19 = int_to_ptr.vmem [resolvable:$true] %s1173_s19 }
 0x743   : > { %s2050_s0 = sld [smem:[#allocation8_spill]] }
 0x744   : > { %s2052_s17 = sld [smem:[#allocation23_spill]] }
 0x748   : > { %s1434_s27 = sshll.u32 %s2049_s26, 3 }
 0x749   : > { %s2054_s20 = sand.u32 1, %s2050_s0  }
 0x74a   : > { %s2053_s30 = smov %s2052_s17  ;;  %s1171_s22 = scalar_lea.hbm %s2052_s17, %s1434_s27 }
 0x74b   : > { %s1175_s11 = sshll.u32 %s1171_s22, 4  ;;  %s1161_s24 = scalar_lea.sflag [#allocation5], %s2054_s20  ;;  %s1176_s11 = int_to_ptr.hbm [resolvable:$true] %s1175_s11 }
 0x74c   : > { %s1583_s21 = sshra.s32 %s1176_s11, 4  ;;  %s1589_s25 = scalar_lea.hbm %s2053_s30, 16  ;;  %s1584_s21 = int_to_ptr.hbm [resolvable:$true] %s1583_s21 }
 0x74d   : > { %s1585_s29 = scalar_lea.hbm %s1584_s21, 8  ;;  %p1590_p6 = scmp.lt.s32.totalorder %s1584_s21, %s2053_s30 }
 0x74e   : > { %p1586_p2 = scmp.ne.s32.totalorder %s1584_s21, %s1585_s29  ;;  %p1591_p7 = scmp.lt.s32.totalorder %s1589_s25, %s1585_s29 }
 0x750   : > { %p1587_p4 = pnand %p1586_p2, %p1783_p3  ;;  %p1592_p8 = por %p1591_p7, %p1590_p6 }
 0x752   : > { %p1588_p5 = pneg %p1587_p4 }
 0x754   : > { %p1593_p10 = pnand %p1592_p8, %p1588_p5 }
 0x756   : > { %1596 = shalt.err (!%p1593_p10)
}
 0x757   : > { %1455 = dma.vmem_to_hbm [thread:$0]  (%p1783_p3), %s1174_s19, 128, %s1176_s11, %s1161_s24  }
 0x758 PF: > { %s2055_s16 = sld [smem:[#allocation13_spill]] }
 0x759   : > { %s2056_s15 = sld [smem:[#allocation7_spill]] }
 0x75e   : > { %p1461_p11 = scmp.ge.s32.totalorder %s2055_s16, 2 }
 0x75f   : > { %s1187_s12 = sand.u32 1, %s2056_s15  }
 0x760   : > { %p1458_p12 = pnand %p1461_p11, %p1793_p9  ;;  %s1188_s26 = scalar_lea.sflag [#allocation5], %s1187_s12 }
 0x762   : > { %p1459_p13 = pneg %p1458_p12 }
 0x764   : > { %1630 = dma.done.wait (%p1459_p13), %s1188_s26, 128  }
 0x765   : > { %1632 = vsyncadd (%p1459_p13), %s1188_s26, 4294967168  ;;  %s24_s24 = sadd.s32 1, %s2055_s16   ;;  %s2058_s17 = sld [smem:[#allocation8_spill]] }
 0x766   : > { %p21_p0 = scmp.ge.s32.totalorder %s24_s24, 6   ;;  %s2059_s18 = sld [smem:[#allocation9_spill]] }
 0x767   : > { %s2060_s19 = sld [smem:[#allocation18_spill]] }
 0x768   : > { %s2061_s20 = sld [smem:[#allocation11_spill]]  ;;  %23 = sbr.rel (!%p21_p0) target bundleno = 11 (0xb), region = 137 }
 0x769   : > { %s2062_s21 = sld [smem:[#allocation12_spill]] }
 0x76a   : > { %s2063_s22 = sld [smem:[#allocation14_spill]] }
 0x76b   : > { %s2064_s23 = sld [smem:[#allocation16_spill]] }
 0x76d   :  { %1194 = vsyncpa [#allocation5], 1 }
 0x76e   :  { %1196 = vsyncpa [#allocation5 + $0x1], 1 }

</bundles_post_ra>
